<compile_context>
chip_gen: v7x
topology: tpu7x:2x2x1
jax: 0.10.0
libtpu: 0.0.40
codegen_flags: <defaults>
</compile_context>

<pallas_src>
import math

import jax
import jax.numpy as jnp
from jax import lax
from jax.experimental import pallas as pl
from jax.experimental.pallas import tpu as pltpu


def _round_up(x: int, m: int) -> int:
    return (x + m - 1) // m * m


def _vmem_capacity_bytes() -> int:
    try:
        return int(pltpu.get_tpu_info().vmem_capacity_bytes)
    except Exception:
        return 64 * 1024 * 1024   # conservative fallback (v7x-sized VMEM)


# ---------------------------------------------------------------------------
# Hoisted row-wise L2 normalization of the features (one tiny pass).
# ---------------------------------------------------------------------------
def _l2norm_rows_kernel(x_ref, o_ref):
    x = x_ref[...].astype(jnp.float32)
    inv = lax.rsqrt(jnp.maximum(jnp.sum(x * x, axis=1, keepdims=True), 1e-12))
    o_ref[...] = (x * inv).astype(o_ref.dtype)


# ---------------------------------------------------------------------------
# Fused weight pass: L2-normalize rows of (C, F), cast to bf16, and write the
# block TRANSPOSED so the result lands in HBM as (F, C) ready for the MXU.
# ---------------------------------------------------------------------------
def _l2norm_transpose_kernel(w_ref, o_ref):
    x = w_ref[...].astype(jnp.float32)                      # (tc, F)
    inv = lax.rsqrt(jnp.maximum(jnp.sum(x * x, axis=1, keepdims=True), 1e-12))
    o_ref[...] = (x * inv).T.astype(o_ref.dtype)            # (F, tc)


# ---------------------------------------------------------------------------
# Main ArcFace kernel: cosine matmul + per-row margin correction on one tile.
# Grid order: (class tile j = OUTER, batch tile i = INNER) -> weight resident.
# ---------------------------------------------------------------------------
def _make_arcface_kernel(tc_size, cos_m, sin_m, scale):
    def kernel(tgt_ref, featn_ref, wnt_ref, out_ref):
        j = pl.program_id(0)                                 # class-tile index

        # (tb, F) bf16 @ (F, tc) bf16 -> (tb, tc) f32 on the MXU.
        cos = jnp.dot(featn_ref[...], wnt_ref[...],
                      preferred_element_type=jnp.float32)

        # Per-row target extraction: one compare + one masked lane reduce.
        local_tgt = tgt_ref[...] - j * tc_size               # (tb, 1) int32
        col = lax.broadcasted_iota(jnp.int32, cos.shape, 1)  # (tb, tc)
        is_tgt = col == local_tgt                            # (tb, tc) bool

        tgt_cos = jnp.sum(jnp.where(is_tgt, cos, 0.0), axis=1, keepdims=True)
        cos_c = jnp.clip(tgt_cos, -1.0, 1.0)                 # (tb, 1)
        sin_t = jnp.sqrt(jnp.maximum(1.0 - cos_c * cos_c, 0.0))
        corrected = cos_c * cos_m - sin_t * sin_m            # cos(theta + m)

        out = jnp.where(is_tgt, corrected, cos)              # blend, broadcast
        out_ref[...] = (scale * out).astype(out_ref.dtype)

    return kernel


def arcface_head(feature, weight, target, *, margin=0.5, scale=64.0,
                 tb_max=None, tc_max=None, out_dtype=jnp.float32,
                 mxu_dtype=jnp.bfloat16):
    """feature: (B, F) f32, weight: (C, F) f32, target: (B,) int -> (B, C)."""
    b, f = feature.shape
    c, f2 = weight.shape
    assert f == f2
    assert target.shape == (b,)

    # Generation-aware defaults (128 MiB VMEM on v5e/v6e, 64 MiB on v7x).
    big_vmem = _vmem_capacity_bytes() >= 100 * 1024 * 1024
    if tb_max is None:
        tb_max = 256
    if tc_max is None:
        tc_max = 4096 if big_vmem else 2048
    vmem_limit = (96 if big_vmem else 56) * 1024 * 1024

    # Tile sizes (sublane dim multiple of 8, lane dim multiple of 128).
    fp = _round_up(max(f, 128), 128)
    tb = min(tb_max, _round_up(b, 8));   tb = max(8, tb - tb % 8)
    tc = min(tc_max, _round_up(c, 128)); tc = max(128, tc - tc % 128)
    bp = _round_up(b, tb)
    cp = _round_up(c, tc)
    nbt, nct = bp // tb, cp // tc

    # Pad ONCE on the raw inputs (all no-ops when shapes are already aligned).
    # Zero rows / zero feature columns change neither row norms nor dots.
    feat, w = feature, weight
    if fp != f:
        feat = jnp.pad(feat, ((0, 0), (0, fp - f)))
        w = jnp.pad(w, ((0, 0), (0, fp - f)))
    if bp != b:
        feat = jnp.pad(feat, ((0, bp - b), (0, 0)))
    if cp != c:
        w = jnp.pad(w, ((0, cp - c), (0, 0)))

    norm_params = pltpu.CompilerParams(dimension_semantics=("parallel",),
                                       vmem_limit_bytes=vmem_limit)

    # Hoisted feature L2 normalization -> bf16 MXU operand.
    feat_n = pl.pallas_call(
        _l2norm_rows_kernel,
        out_shape=jax.ShapeDtypeStruct((bp, fp), mxu_dtype),
        grid=(nbt,),
        in_specs=[pl.BlockSpec((tb, fp), lambda i: (i, 0))],
        out_specs=pl.BlockSpec((tb, fp), lambda i: (i, 0)),
        compiler_params=norm_params,
    )(feat)

    # Fused weight L2 normalization + bf16 cast + transpose -> (F, C) in HBM.
    w_n_t = pl.pallas_call(
        _l2norm_transpose_kernel,
        out_shape=jax.ShapeDtypeStruct((fp, cp), mxu_dtype),
        grid=(nct,),
        in_specs=[pl.BlockSpec((tc, fp), lambda i: (i, 0))],
        out_specs=pl.BlockSpec((fp, tc), lambda i: (0, i)),
        compiler_params=norm_params,
    )(w)

    tgt = target.astype(jnp.int32).reshape(b, 1)
    if bp != b:
        tgt = jnp.pad(tgt, ((0, bp - b), (0, 0)), constant_values=-1)

    kernel = _make_arcface_kernel(tc, math.cos(margin), math.sin(margin),
                                  float(scale))

    out = pl.pallas_call(
        kernel,
        out_shape=jax.ShapeDtypeStruct((bp, cp), out_dtype),
        # Class tiles OUTER (slow), batch tiles INNER (fast): the (F, tc)
        # weight block index depends only on the outer axis, so it stays
        # resident across the inner loop and is streamed from HBM once total.
        grid=(nct, nbt),
        in_specs=[
            pl.BlockSpec((tb, 1), lambda j, i: (i, 0)),    # targets
            pl.BlockSpec((tb, fp), lambda j, i: (i, 0)),   # normalized features
            pl.BlockSpec((fp, tc), lambda j, i: (0, j)),   # normalized weight^T
        ],
        out_specs=pl.BlockSpec((tb, tc), lambda j, i: (i, j)),
        compiler_params=pltpu.CompilerParams(
            dimension_semantics=("parallel", "parallel"),  # megacore shards outer
            vmem_limit_bytes=vmem_limit),
    )(tgt, feat_n, w_n_t)

    if bp != b or cp != c:
        out = out[:b, :c]
    return out


# ---------------------------------------------------------------------------
# Reference implementations & init (for testing only).
# ---------------------------------------------------------------------------
def init_arcface_weight(key, class_num, feature_num):
    # PyTorch init: uniform_(-1, 1).renorm_(2, 0, 1e-5).mul_(1e5) == unit-norm rows.
    w = jax.random.uniform(key, (class_num, feature_num),
                           minval=-1.0, maxval=1.0, dtype=jnp.float32)
    norms = jnp.sqrt(jnp.sum(w * w, axis=1, keepdims=True))
    return w / jnp.maximum(norms, 1e-7)


def arcface_ref(feature, weight, target, margin=0.5, scale=64.0):
    # Exact f32 mirror of the PyTorch forward.
    feat_n = feature / jnp.linalg.norm(feature, axis=1, keepdims=True)
    w_n = weight / jnp.linalg.norm(weight, axis=1, keepdims=True)
    cos_theta = feat_n @ w_n.T
    theta = jnp.arccos(jnp.clip(cos_theta, -1.0, 1.0))
    cos_theta_m = jnp.cos(theta + margin)
    one_hot = jax.nn.one_hot(target, weight.shape[0], dtype=jnp.float32)
    return scale * (one_hot * cos_theta_m + (1.0 - one_hot) * cos_theta)


def arcface_ref_mxu(feature, weight, target, margin=0.5, scale=64.0):
    # Mirrors the kernel's bf16 MXU inputs (isolates kernel logic from bf16 error).
    feat_n = (feature * lax.rsqrt(jnp.sum(feature * feature, axis=1, keepdims=True))
              ).astype(jnp.bfloat16)
    w_n = (weight * lax.rsqrt(jnp.sum(weight * weight, axis=1, keepdims=True))
           ).astype(jnp.bfloat16)
    cos = jnp.dot(feat_n, w_n.T, preferred_element_type=jnp.float32)
    cos_c = jnp.clip(cos, -1.0, 1.0)
    sin_t = jnp.sqrt(jnp.maximum(1.0 - cos_c * cos_c, 0.0))
    cos_m = cos_c * math.cos(margin) - sin_t * math.sin(margin)
    one_hot = jax.nn.one_hot(target, weight.shape[0], dtype=jnp.float32)
    return scale * (one_hot * cos_m + (1.0 - one_hot) * cos)


if __name__ == "__main__":
    # Small demo shapes chosen to exercise the multi-tile path with the swapped
    # grid order: grid = (3 class tiles, 2 batch tiles), plus B / C / F padding
    # (B=24->32, C=300->384, F=96->128).
    B, FEAT, CLS = 24, 96, 300

    key = jax.random.PRNGKey(0)
    k_feat, k_w, k_tgt = jax.random.split(key, 3)

    feature = jax.random.normal(k_feat, (B, FEAT), dtype=jnp.float32)
    weight = init_arcface_weight(k_w, CLS, FEAT)
    target = jax.random.randint(k_tgt, (B,), 0, CLS, dtype=jnp.int32)

    ref_mxu = arcface_ref_mxu(feature, weight, target)
    ref_exact = arcface_ref(feature, weight, target)

    # 1) Explicit small tiles -> multi-tile grid (3, 2).
    out = arcface_head(feature, weight, target, tb_max=16, tc_max=128)
    out = jax.block_until_ready(out)
    assert out.shape == (B, CLS)
    assert bool(jnp.all(jnp.isfinite(out)))
    assert jnp.allclose(out, ref_mxu, atol=5e-2, rtol=1e-2), "mismatch vs bf16 ref"
    # Loose check vs the exact f32 PyTorch-equivalent reference (tolerance
    # covers the bf16 MXU-input rounding bound: 64 * 2^-8 ~ 0.25).
    assert jnp.allclose(out, ref_exact, atol=5e-1, rtol=2e-2), "mismatch vs f32 ref"

    # 2) Default (generation-aware) tiles -> single-tile grid at these shapes.
    out2 = arcface_head(feature, weight, target)
    out2 = jax.block_until_ready(out2)
    assert out2.shape == (B, CLS)
    assert bool(jnp.all(jnp.isfinite(out2)))
    assert jnp.allclose(out2, ref_mxu, atol=5e-2, rtol=1e-2), "mismatch vs bf16 ref (defaults)"

    print("KERNEL_OK")
</pallas_src>

<mosaic_0001>
module attributes {stable_mosaic.version = 11 : i64} {
  func.func @_l2norm_rows_kernel(%arg0: i32, %arg1: memref<16x128xf32, #tpu.memory_space<vmem>>, %arg2: memref<16x128xbf16, #tpu.memory_space<vmem>>) attributes {dimension_semantics = [#tpu.dimension_semantics<parallel>], iteration_bounds = array<i64: 2>, scalar_prefetch = 0 : i64, scratch_operands = 0 : i64, tpu.core_type = #tpu.core_type<tc>, window_params = [{transform_indices = @transform_0, window_bounds = array<i64: 16, 128>}, {transform_indices = @transform_1, window_bounds = array<i64: 16, 128>}]} {
    %c0 = arith.constant 0 : index
    %c0_0 = arith.constant 0 : index
    %0 = vector.load %arg1[%c0, %c0_0] : memref<16x128xf32, #tpu.memory_space<vmem>>, vector<16x128xf32>
    %1 = arith.mulf %0, %0 : vector<16x128xf32>
    %cst = arith.constant dense<0.000000e+00> : vector<16xf32>
    %2 = vector.multi_reduction <add>, %1, %cst [1] : vector<16x128xf32> to vector<16xf32>
    %3 = vector.shape_cast %2 : vector<16xf32> to vector<16x1xf32>
    %cst_1 = arith.constant 9.99999996E-13 : f32
    %4 = vector.broadcast %cst_1 : f32 to vector<16x1xf32>
    %5 = arith.maximumf %3, %4 : vector<16x1xf32>
    %6 = math.rsqrt %5 : vector<16x1xf32>
    %7 = vector.broadcast %6 : vector<16x1xf32> to vector<16x128xf32>
    %8 = arith.mulf %0, %7 : vector<16x128xf32>
    %9 = arith.truncf %8 : vector<16x128xf32> to vector<16x128xbf16>
    %c0_2 = arith.constant 0 : index
    %c0_3 = arith.constant 0 : index
    %10 = vector.load %arg2[%c0_2, %c0_3] : memref<16x128xbf16, #tpu.memory_space<vmem>>, vector<16x128xbf16>
    tpu.vector_store %arg2[%c0_2, %c0_3], %9 {strides = array<i32>} : memref<16x128xbf16, #tpu.memory_space<vmem>>, vector<16x128xbf16>,
    return
  }
  func.func @transform_0(%arg0: i32) -> (i32, i32) {
    %c0_i32 = arith.constant 0 : i32
    %c0_i32_0 = arith.constant 0 : i32
    return %arg0, %c0_i32 : i32, i32
  }
  func.func @transform_1(%arg0: i32) -> (i32, i32) {
    %c0_i32 = arith.constant 0 : i32
    %c0_i32_0 = arith.constant 0 : i32
    return %arg0, %c0_i32 : i32, i32
  }
}

</mosaic_0001>

<bundles_post_ra>
// kernel: tpu_custom_call.1
= control target key start
LH: loop header
LB: loop body
LE: loop exit
PB: predicated region body
PF: predicated region fallthrough
CT: control target
= control target key end

     0   :  { %6 = vsyncpa [#allocation3], 0  ;;  %s604_s0 = inlined_call_operand.hbm [shape: f32[32,128], index: 0, kind: input, shape index: {}]   ;;  %s605_s1 = inlined_call_operand.hbm [shape: bf16[32,128], index: 1, kind: output, shape index: {}]  }
   0x1   :  { %8 = vsyncpa [#allocation3 + $0x1], 0 }
   0x2   :  { %9 = vsyncpa [#allocation4], 0 }
   0x3   :  { %11 = vsyncpa [#allocation4 + $0x1], 0  ;;  %s441_s6 = smov 0   ;;  %s443_s7 = smov 0  }
   0x4   :  { %s445_s8 = smov 0   ;;  %s447_s9 = smov 0  }
   0x5 LB: > { %s462_s10 = sadd.s32 4294967295, %s423_s9   ;;  %s248_s11 = sadd.s32 4294967294, %s423_s9   ;;  %s423_s9 = sphi %s447_s9, %s618_s9   ;;  %s419_s8 = sphi %s445_s8, %s617_s8   ;;  %s415_s7 = sphi %s443_s7, %s616_s7   ;;  %s411_s6 = sphi %s441_s6, %s615_s6  }
   0x6   : > { %s466_s12 = sadd.s32 1, %s423_s9   ;;  %s24_s13 = sadd.s32 1, %s419_s8 }
   0x7   : > { %s21_s14 = ssub.s32 %s423_s9, %s466_s12  ;;  %p31_p0 = scmp.ne.s32.totalorder %s419_s8, %s415_s7 }
   0x8   : > { %p22_p1 = scmp.eq.s32.totalorder %s21_s14, 0  ;;  %p32_p2 = scmp.eq.s32.totalorder %s423_s9, 0 }
   0x9   : > { %p37_p3 = scmp.ne.s32.totalorder %s415_s7, %s411_s6  ;;  %p38_p4 = scmp.eq.s32.totalorder %s462_s10, 0 }
   0xa   : > { %s478_s15 = scalar_select %p22_p1, %s419_s8, %s24_s13  }
   0xb   : > { %p480_p5 = por %p32_p2, %p31_p0  ;;  %p484_p6 = por %p38_p4, %p37_p3 }
   0xc   : > { %p61_p7 = scmp.eq.s32.totalorder %s462_s10, 1  ;;  %p67_p8 = scmp.eq.s32.totalorder %s248_s11, 1 }
   0xd   : > { %p285_p10 = scmp.lt.s32.totalorder %s423_s9, 2  ;;  %s87_s20 = sand.u32 1, %s419_s8  }
   0xe   : > { %p491_p11 = por %p61_p7, %p31_p0  ;;  %p495_p12 = por %p67_p8, %p37_p3 }
   0xf   : > { %s264_s21 = sshll.u32 %s423_s9, 8  ;;  %s251_s22 = sshll.u32 %s87_s20, 4 }
  0x10   : > { %s609_s18 = scalar_select %p491_p11, 1, 0 }
  0x11   : > { %s610_s19 = scalar_select %p495_p12, 1, 0 }
  0x12   : > { %s504_s25 = scalar_lea.hbm %s604_s0, %s264_s21  ;;  %s91_s26 = scalar_lea.vmem [#allocation2], %s251_s22 }
  0x13   : > { %s98_s27 = sshll.u32 %s91_s26, 4  ;;  %p508_p13 = pnand %p285_p10, %p480_p5  ;;  %s512_s27 = int_to_ptr.vmem [resolvable:$true] %s98_s27 }
  0x14   : > { %s514_s29 = scalar_lea.sflag [#allocation3], %s87_s20  ;;  %s327_s30 = scalar_lea.hbm %s504_s25, 256 }
  0x15   : > { %p328_p0 = scmp.ne.s32.totalorder %s504_s25, %s327_s30  ;;  %p329_p1 = pneg %p508_p13 }
  0x16   : > { %s332_s4 = scalar_lea.hbm %s604_s0, 512  ;;  %p333_p4 = scmp.lt.u32.totalorder %s504_s25, %s604_s0 }
  0x17   : > { %p330_p2 = pnand %p329_p1, %p328_p0  ;;  %p334_p5 = scmp.lt.u32.totalorder %s332_s4, %s327_s30 }
  0x18   : > { %p336_p8 = scmp.lt.u32.totalorder %s327_s30, %s504_s25 }
  0x19   : > { %p331_p3 = pneg %p330_p2  ;;  %p335_p7 = por %p334_p5, %p333_p4 }
  0x1b   : > { %p337_p10 = por %p336_p8, %p335_p7 }
  0x1d   : > { %p338_p9 = pnand %p337_p10, %p331_p3 }
  0x1f   : > { %341 = shalt.err (!%p338_p9)
}
  0x20   : > { %s342_s13 = scalar_lea.vmem %s512_s27, 256  ;;  %s425_s14 = smov [#allocation2]  }
  0x21   : > { %p343_p0 = scmp.ne.s32.totalorder %s512_s27, %s342_s13  ;;  %s347_s16 = sshll.u32 %s425_s14, 4  ;;  %s348_s16 = int_to_ptr.vmem [resolvable:$false] %s347_s16 }
  0x22   : > { %s349_s20 = scalar_lea.vmem %s348_s16, 512  ;;  %p350_p11 = scmp.lt.s32.totalorder %s512_s27, %s348_s16 }
  0x23   : > { %p345_p2 = pnand %p343_p0, %p329_p1  ;;  %p351_p4 = scmp.lt.s32.totalorder %s349_s20, %s342_s13 }
  0x25   : > { %p346_p12 = pneg %p345_p2  ;;  %p352_p5 = por %p351_p4, %p350_p11 }
  0x27   : > { %p353_p7 = pnand %p352_p5, %p346_p12 }
  0x29   : > { %356 = shalt.err (!%p353_p7)
}
  0x2a   : > { %s426_s21 = smov 128   ;;  %s427_s22 = smov 8  }
  0x2b   : > { %280 = dma.hbm_to_vmem [thread:$0]  (!%p508_p13), %s504_s25, 256, %s512_s27, %s514_s29, %s426_s21, %s426_s21, %s427_s22  }
  0x2c   : > { %p254_p9 = scmp.ge.s32.totalorder %s423_s9, 1  ;;  %p106_p1 = scmp.lt.s32.totalorder %s423_s9, 3 }
  0x2e   : > { %p107_p3 = pnand %p254_p9, %p106_p1 }
  0x2f   : > { %s545_s23 = sand.u32 (!%p107_p3), 1, %s415_s7  }
  0x30   : > { %110 = sbr.rel (%p107_p3) target bundleno = 237 (0xed), region = 24  ;;  %s255_s24 = sshll.u32 (!%p107_p3), %s545_s23, 4 }
  0x31   : > { %s113_s26 = scalar_lea.sflag (!%p107_p3), [#allocation3], %s545_s23  ;;  %s116_s30 = scalar_lea.vmem (!%p107_p3), [#allocation2], %s255_s24 }
  0x37   : > { %402 = dma.done.wait (%p484_p6), %s113_s26, 256  }
  0x38   : > { %404 = vsyncadd (%p484_p6), %s113_s26, 4294967040  ;;  %v137_v0 = vld [vmem:[%s116_s30] sm:$0xff]  ;;  %v138_v1 = vld [vmem:[%s116_s30 + $0x8] sm:$0xff]  ;;  %s256_s25 = sshll.u32 %s545_s23, 3  ;;  %s267_s17 = sshll.u32 %s462_s10, 7 }
  0x39   : > { %v139_v2 = vmul.f32 %v137_v0, %v137_v0  ;;  %v140_v3 = vmul.f32 %v138_v1, %v138_v1  ;;  %s134_s27 = scalar_lea.vmem [#allocation5], %s256_s25  ;;  %s558_s3 = scalar_lea.hbm %s605_s1, %s267_s17 }
  0x3a   : > { %s175_s28 = sshll.u32 %s134_s27, 4  ;;  %s162_s4 = scalar_lea.sflag [#allocation4], %s545_s23  ;;  %s560_s28 = int_to_ptr.vmem [resolvable:$true] %s175_s28 }
  0x3b   : > { %141 = vadd.xlane.f32.xlu0 %v139_v2  ;;  %s357_s5 = scalar_lea.vmem %s560_s28, 128  ;;  %p612_p11 = scmp.ne.s32.totalorder %s609_s18, 0 }
  0x3c   : > { %p358_p6 = scmp.ne.s32.totalorder %s560_s28, %s357_s5  ;;  %s428_s10 = smov [#allocation5]  }
  0x3d   : > { %s361_s11 = sshll.u32 %s428_s10, 4  ;;  %s362_s11 = int_to_ptr.vmem [resolvable:$false] %s361_s11 }
  0x3e   : > { %p359_p12 = pnand %p358_p6, %p612_p11  ;;  %s363_s13 = scalar_lea.vmem %s362_s11, 256 }
  0x3f   : > { %143 = vadd.xlane.f32.xlu0 %v140_v3  ;;  %p364_p8 = scmp.lt.s32.totalorder %s560_s28, %s362_s11  ;;  %p365_p10 = scmp.lt.s32.totalorder %s363_s13, %s357_s5 }
  0x40   : > { %p360_p13 = pneg %p359_p12 }
  0x41   : > { %p366_p0 = por %p365_p10, %p364_p8 }
  0x43   : > { %p367_p2 = pnand %p366_p0, %p360_p13 }
  0xc8   : > { %v142_v4 = vpop.xlane.xlu0 %141 }
  0xc9   : > { %v145_v5 = vmax.f32 %v142_v4, 1e-12 }
  0xcb   : > { %323 = vrsqrt.f32 %v145_v5 }
  0xcc   : > { %v144_v6 = vpop.xlane.xlu0 %143 }
  0xcd   : > { %v146_v7 = vmax.f32 %v144_v6, 1e-12 }
  0xcf   : > { %325 = vrsqrt.f32 %v146_v7 }
  0xd5   : > { %v324_v8 = vpop.eup %323 }
  0xd6   : > { %v149_v10 = vmul.f32 %v324_v8, %v137_v0 }
  0xd9   : > { %v326_v9 = vpop.eup %325 }
  0xda   : > { %v150_v11 = vmul.f32 %v326_v9, %v138_v1 }
  0xdc   : > { %v271_v12 = vpack.c.bf16 %v150_v11, %v149_v10 }
  0xde   : > { %272 = vst [vmem:[%s134_s27] sm:$0xff] %v271_v12  }
  0xdf   : > { %370 = shalt.err (!%p367_p2)
}
  0xe0   : > { %s371_s14 = scalar_lea.hbm %s558_s3, 128  ;;  %s375_s21 = scalar_lea.hbm %s605_s1, 256 }
  0xe1   : > { %p372_p4 = scmp.ne.s32.totalorder %s558_s3, %s371_s14  ;;  %p376_p9 = scmp.lt.u32.totalorder %s558_s3, %s605_s1 }
  0xe2   : > { %p377_p1 = scmp.lt.u32.totalorder %s375_s21, %s371_s14  ;;  %p379_p6 = scmp.lt.u32.totalorder %s371_s14, %s558_s3 }
  0xe3   : > { %p373_p5 = pnand %p372_p4, %p612_p11 }
  0xe4   : > { %p378_p3 = por %p377_p1, %p376_p9 }
  0xe5   : > { %p374_p7 = pneg %p373_p5 }
  0xe6   : > { %p380_p12 = por %p379_p6, %p378_p3 }
  0xe8   : > { %p381_p13 = pnand %p380_p12, %p374_p7 }
  0xea   : > { %384 = shalt.err (!%p381_p13)
}
  0xeb   : > { %s429_s26 = smov 64   ;;  %s430_s30 = smov 4  }
  0xec   : > { %275 = dma.vmem_to_hbm [thread:$0]  (%p612_p11), %s560_s28, 128, %s558_s3, %s162_s4, %s429_s26, %s429_s26, %s430_s30  }
  0xed PF: > { %s190_s25 = sand.u32 1, %s411_s6   ;;  %p613_p8 = scmp.ne.s32.totalorder %s610_s19, 0 }
  0xee   : > { %p614_p10 = scmp.ge.s32.totalorder %s423_s9, 2  ;;  %s191_s17 = scalar_lea.sflag [#allocation4], %s190_s25 }
  0xf0   : > { %p282_p0 = pnand %p614_p10, %p613_p8 }
  0xf2   : > { %406 = dma.done.wait (!%p282_p0), %s191_s17, 128  }
  0xf3   : > { %408 = vsyncadd (!%p282_p0), %s191_s17, 4294967168  ;;  %p14_p2 = scmp.ge.s32.totalorder %s466_s12, 4   ;;  %s615_s6 = smov %s415_s7 }
  0xf4   : > { %s616_s7 = smov %s419_s8  ;;  %s617_s8 = smov %s478_s15 }
  0xf5   : > { %s618_s9 = smov %s466_s12  ;;  %16 = sbr.rel (!%p14_p2) target bundleno = 5 (0x5), region = 69 }
  0xfc   :  { %196 = vsyncpa [#allocation3], 1 }
  0xfd   :  { %198 = vsyncpa [#allocation3 + $0x1], 1 }
  0xfe   :  { %199 = vsyncpa [#allocation4], 1 }
  0xff   :  { %201 = vsyncpa [#allocation4 + $0x1], 1 }

</bundles_post_ra>
